<compile_context>
chip_gen: v7x
topology: tpu7x:2x2x1
jax: 0.10.0
libtpu: 0.0.40
codegen_flags: <defaults>
</compile_context>

<pallas_src>
import functools

import jax
import jax.numpy as jnp
import numpy as np
from jax.experimental import pallas as pl
from jax.experimental.pallas import tpu as pltpu

KH = KW = 3
NTAPS = KH * KW
LANE_PACK = 4  # images packed along the lane (channel) axis -> 4*32 = 128 lanes


def _round_up(x, m):
    return (x + m - 1) // m * m


# ---------------------------------------------------------------------------
# Fused kernel: conv1 -> conv2(grouped, block-diag) -> relu, all in VMEM.
# One grid step processes LANE_PACK lane-packed images.
# ---------------------------------------------------------------------------
def _fused_conv_kernel(owe, t1_ref, w1_ref, w2_ref, b2_ref, o_ref, e_ref):
    # t1_ref : (P_E, 28*LP)     conv1 im2col taps (+bias-indicator col / image)
    # w1_ref : (28*LP, 32*LP)   conv1 weights, bias folded, block-diag / image
    # w2_ref : (9, 32*LP, 32*LP) conv2 per-tap block-diag (groups x images)
    # b2_ref : (1, 32*LP)       conv2 bias (f32)
    # o_ref  : (Q, 32*LP)       flat conv2 output rows (Q = OH * OWe)
    # e_ref  : (P_E, 32*LP)     VMEM scratch: conv1 result, never leaves VMEM

    # conv1: single K-folded lane-dense GEMM
    e_ref[...] = jnp.dot(
        t1_ref[...], w1_ref[...], preferred_element_type=jnp.float32
    ).astype(e_ref.dtype)

    q, c = o_ref.shape

    # conv2 bias pre-loaded into the f32 accumulator (no epilogue add)
    acc = jnp.broadcast_to(b2_ref[...], (q, c)).astype(jnp.float32)

    # conv2: 9 statically-shifted lane-dense (Q,128)@(128,128) GEMMs.
    # (On v5e one could instead build a (Q, 9*128) im2col scratch and do a
    #  single K=1152 GEMM; with K=128 per tap the MXU fill is already decent.)
    for k in range(NTAPS):
        kh, kw = divmod(k, KW)
        d = kh * owe + kw  # static flat-row shift; kh*owe is 8-aligned (owe%8==0)
        acc = acc + jnp.dot(
            e_ref[pl.ds(d, q), :], w2_ref[k], preferred_element_type=jnp.float32
        )

    o_ref[...] = jnp.maximum(acc, 0.0).astype(o_ref.dtype)


# ---------------------------------------------------------------------------
# Weight preprocessing: done ONCE, outside the traced forward.
# ---------------------------------------------------------------------------
def prepare_params(w1, b1, w2, b2, *, groups=4, lane_pack=LANE_PACK,
                   compute_dtype=jnp.bfloat16):
    cout1, cin = w1.shape[0], w1.shape[1]
    cout2, cing = w2.shape[0], w2.shape[1]
    coutg = cout2 // groups

    # conv1 weight matrix: K ordered (kh, kw, cin); bias folded as last row
    # (paired with an indicator column in t1 so zero-padded halo rows stay 0).
    w1_mat = jnp.transpose(w1, (2, 3, 1, 0)).reshape(KH * KW * cin, cout1)
    w1_mat = jnp.concatenate([w1_mat, b1[None, :].astype(w1.dtype)], axis=0)
    # block-diagonal across lane-packed images (same block per image)
    w1_bd = jnp.kron(jnp.eye(lane_pack, dtype=w1_mat.dtype), w1_mat)  # (28*LP, 32*LP)

    # conv2: per-tap block-diagonal over groups -> lane-dense (32,32) per image
    w2g = w2.reshape(groups, coutg, cing, KH, KW)
    blocks = jnp.transpose(w2g, (3, 4, 0, 2, 1))              # (kh,kw,g,cing,coutg)
    w2_img = jnp.einsum("hwgio,gk->hwgiko", blocks,
                        jnp.eye(groups, dtype=w2.dtype))
    w2_img = w2_img.reshape(KH * KW, groups * cing, cout2)    # (9, 32, 32)
    # ... then block-diagonal again across lane-packed images -> (9, 128, 128)
    eye_lp = jnp.eye(lane_pack, dtype=w2.dtype)
    w2_bd = jnp.einsum("tij,lm->tlimj", w2_img, eye_lp).reshape(
        KH * KW, lane_pack * groups * cing, lane_pack * cout2)

    b2_row = jnp.tile(b2, lane_pack).reshape(1, lane_pack * cout2).astype(jnp.float32)

    return (w1_bd.astype(compute_dtype), w2_bd.astype(compute_dtype), b2_row)


# ---------------------------------------------------------------------------
# Forward: layout / im2col glue in XLA, fused compute in ONE gridded Pallas call
# ---------------------------------------------------------------------------
def model_forward(x, packed, *, lane_pack=LANE_PACK, compute_dtype=jnp.bfloat16):
    w1_bd, w2_bd, b2_row = packed
    N, cin, H, W = x.shape
    cl = b2_row.shape[1]          # lane-packed output width (32 * LP)
    cout = cl // lane_pack
    k1 = w1_bd.shape[0]           # 28 * LP

    # conv2 geometry: k=3, stride=2, padding=2, dilation=2
    OH = (H + 2 * 2 - 2 * (KH - 1) - 1) // 2 + 1
    OW = (W + 2 * 2 - 2 * (KW - 1) - 1) // 2 + 1
    # even-grid width incl. conv2's 1-px zero halo, padded to a multiple of 8
    # so the kh row-shifts of the tap slices are sublane aligned.
    OWe = _round_up(OW + 2, 8)
    OHe = OH + 3                  # halo + slack so shifted flat reads stay in range
    P_E = OHe * OWe
    Q = OH * OWe

    NG = pl.cdiv(N, lane_pack)    # batch groups (grid size)
    Np = NG * lane_pack
    xpad = jnp.pad(x, ((0, Np - N), (0, 0), (0, 0), (0, 0)))

    x_nhwc = jnp.transpose(xpad, (0, 2, 3, 1)).astype(jnp.float32)
    xp = jnp.pad(x_nhwc, ((0, 0), (1, 1), (1, 1), (0, 0)))    # conv1 padding = 1

    # conv1 im2col restricted to the EVEN output grid conv2 actually reads
    # (conv2 stride=2 / dil=2 / pad=2 only ever touches even conv1 pixels).
    taps = [xp[:, kh:kh + 2 * OH - 1:2, kw:kw + 2 * OW - 1:2, :]
            for kh in range(KH) for kw in range(KW)]
    ones = jnp.ones((Np, OH, OW, 1), jnp.float32)             # bias indicator
    t = jnp.concatenate(taps + [ones], axis=-1)               # (Np, OH, OW, 28)
    t = jnp.pad(t, ((0, 0), (1, OHe - OH - 1), (1, OWe - OW - 1), (0, 0)))
    # lane-pack LP images along the last dim: (NG, P_E, 28*LP)
    t = t.reshape(NG, lane_pack, OHe, OWe, t.shape[-1])
    t = jnp.transpose(t, (0, 2, 3, 1, 4)).reshape(NG, P_E, k1).astype(compute_dtype)

    flops = NG * (2 * P_E * k1 * cl + NTAPS * 2 * Q * cl * cl)
    bytes_accessed = (t.size * t.dtype.itemsize
                      + w1_bd.size * w1_bd.dtype.itemsize
                      + w2_bd.size * w2_bd.dtype.itemsize
                      + b2_row.size * 4
                      + NG * Q * cl * 4)

    out_flat = pl.pallas_call(
        functools.partial(_fused_conv_kernel, OWe),
        out_shape=jax.ShapeDtypeStruct((NG, Q, cl), jnp.float32),
        grid=(NG,),
        in_specs=[
            # per-group im2col tile (leading batch-group dim squeezed)
            pl.BlockSpec((None, P_E, k1), lambda g: (g, 0, 0)),
            # weights / bias: constant block index -> stay VMEM-resident
            pl.BlockSpec((k1, cl), lambda g: (0, 0)),
            pl.BlockSpec((NTAPS, cl, cl), lambda g: (0, 0, 0)),
            pl.BlockSpec((1, cl), lambda g: (0, 0)),
        ],
        out_specs=pl.BlockSpec((None, Q, cl), lambda g: (g, 0, 0)),
        scratch_shapes=[pltpu.VMEM((P_E, cl), compute_dtype)],
        compiler_params=pltpu.CompilerParams(
            dimension_semantics=("parallel",)),   # v7x: split batch groups across TCs
        cost_estimate=pl.CostEstimate(
            flops=flops, transcendentals=0, bytes_accessed=bytes_accessed),
    )(t, w1_bd, w2_bd, b2_row)

    # (NG, Q, 32*LP) -> (NG, OH, OWe, LP, 32) -> drop junk/pad columns -> NCHW
    out = out_flat.reshape(NG, OH, OWe, lane_pack, cout)[:, :, :OW]
    out = jnp.transpose(out, (0, 3, 4, 1, 2)).reshape(Np, cout, OH, OW)
    return out[:N]


# ---------------------------------------------------------------------------
# Pure-JAX reference (for correctness check)
# ---------------------------------------------------------------------------
def reference(x, w1, b1, w2, b2):
    dn = ("NCHW", "OIHW", "NCHW")
    y = jax.lax.conv_general_dilated(x, w1, (1, 1), ((1, 1), (1, 1)),
                                     dimension_numbers=dn)
    y = y + b1[None, :, None, None]
    z = jax.lax.conv_general_dilated(y, w2, (2, 2), ((2, 2), (2, 2)),
                                     rhs_dilation=(2, 2), feature_group_count=4,
                                     dimension_numbers=dn)
    z = z + b2[None, :, None, None]
    return jnp.maximum(z, 0.0)


if __name__ == "__main__":
    key = jax.random.PRNGKey(0)
    k1, k2, k3, k4, k5 = jax.random.split(key, 5)

    # Small shapes consistent with the module (original was 1x3x64x64).
    x = jax.random.normal(k1, (2, 3, 16, 16), jnp.float32)
    w1 = jax.random.normal(k2, (32, 3, 3, 3), jnp.float32) * 0.1
    b1 = jax.random.normal(k3, (32,), jnp.float32) * 0.1
    w2 = jax.random.normal(k4, (32, 8, 3, 3), jnp.float32) * 0.1  # groups=4 -> 8 in-ch/group
    b2 = jax.random.normal(k5, (32,), jnp.float32) * 0.1

    packed = prepare_params(w1, b1, w2, b2)           # hoisted, done once (bf16)
    fwd = jax.jit(lambda xx: model_forward(xx, packed))
    out = jax.block_until_ready(fwd(x))

    ref = reference(x, w1, b1, w2, b2)
    # bf16 inputs/weights with f32 accumulation -> slightly looser tolerance
    np.testing.assert_allclose(np.asarray(out), np.asarray(ref),
                               rtol=3e-2, atol=3e-2)
    assert out.shape == (2, 32, 8, 8)
    print("KERNEL_OK")
</pallas_src>

<mosaic_0001>
module attributes {stable_mosaic.version = 11 : i64} {
  func.func @_fused_conv_kernel(%arg0: i32, %arg1: memref<1x176x112xbf16, #tpu.memory_space<vmem>>, %arg2: memref<112x128xbf16, #tpu.memory_space<vmem>>, %arg3: memref<9x128x128xbf16, #tpu.memory_space<vmem>>, %arg4: memref<1x128xf32, #tpu.memory_space<vmem>>, %arg5: memref<1x128x128xf32, #tpu.memory_space<vmem>>, %arg6: memref<176x128xbf16, #tpu.memory_space<vmem>>) attributes {dimension_semantics = [#tpu.dimension_semantics<parallel>], iteration_bounds = array<i64: 1>, scalar_prefetch = 0 : i64, scratch_operands = 1 : i64, tpu.core_type = #tpu.core_type<tc>, window_params = [{transform_indices = @transform_0, window_bounds = array<i64: 1, 176, 112>}, {pipeline_mode = #tpu.pipeline_mode<synchronous>, transform_indices = @transform_1, window_bounds = array<i64: 112, 128>}, {pipeline_mode = #tpu.pipeline_mode<synchronous>, transform_indices = @transform_2, window_bounds = array<i64: 9, 128, 128>}, {pipeline_mode = #tpu.pipeline_mode<synchronous>, transform_indices = @transform_3, window_bounds = array<i64: 1, 128>}, {transform_indices = @transform_4, window_bounds = array<i64: 1, 128, 128>}]} {
    %c0 = arith.constant 0 : index
    %c0_0 = arith.constant 0 : index
    %c0_1 = arith.constant 0 : index
    %0 = vector.load %arg1[%c0, %c0_0, %c0_1] : memref<1x176x112xbf16, #tpu.memory_space<vmem>>, vector<1x176x112xbf16>
    %1 = vector.shape_cast %0 : vector<1x176x112xbf16> to vector<176x112xbf16>
    %c0_2 = arith.constant 0 : index
    %c0_3 = arith.constant 0 : index
    %2 = vector.load %arg2[%c0_2, %c0_3] : memref<112x128xbf16, #tpu.memory_space<vmem>>, vector<112x128xbf16>
    %cst = arith.constant dense<0.000000e+00> : vector<176x128xf32>
    %3 = tpu.matmul %1, %2, %cst {dimension_numbers = #tpu.dot_dimension_numbers<[1], [0], [0], [1], [0, 0, 1, 1], [], []>} : vector<176x112xbf16>, vector<112x128xbf16>, vector<176x128xf32> -> vector<176x128xf32>
    %4 = arith.truncf %3 : vector<176x128xf32> to vector<176x128xbf16>
    %c0_4 = arith.constant 0 : index
    %c0_5 = arith.constant 0 : index
    %5 = vector.load %arg6[%c0_4, %c0_5] : memref<176x128xbf16, #tpu.memory_space<vmem>>, vector<176x128xbf16>
    tpu.vector_store %arg6[%c0_4, %c0_5], %4 {strides = array<i32>} : memref<176x128xbf16, #tpu.memory_space<vmem>>, vector<176x128xbf16>,
    %c0_6 = arith.constant 0 : index
    %c0_7 = arith.constant 0 : index
    %6 = vector.load %arg4[%c0_6, %c0_7] : memref<1x128xf32, #tpu.memory_space<vmem>>, vector<1x128xf32>
    %7 = vector.shape_cast %6 : vector<1x128xf32> to vector<1x128xf32>
    %8 = vector.broadcast %7 : vector<1x128xf32> to vector<128x128xf32>
    %c0_8 = arith.constant 0 : index
    %c0_9 = arith.constant 0 : index
    %9 = vector.load %arg6[%c0_8, %c0_9] : memref<176x128xbf16, #tpu.memory_space<vmem>>, vector<128x128xbf16>
    %c0_10 = arith.constant 0 : index
    %c0_11 = arith.constant 0 : index
    %c0_12 = arith.constant 0 : index
    %10 = vector.load %arg3[%c0_10, %c0_11, %c0_12] : memref<9x128x128xbf16, #tpu.memory_space<vmem>>, vector<1x128x128xbf16>
    %11 = vector.shape_cast %10 : vector<1x128x128xbf16> to vector<128x128xbf16>
    %cst_13 = arith.constant dense<0.000000e+00> : vector<128x128xf32>
    %12 = tpu.matmul %9, %11, %cst_13 {dimension_numbers = #tpu.dot_dimension_numbers<[1], [0], [0], [1], [0, 0, 1, 1], [], []>} : vector<128x128xbf16>, vector<128x128xbf16>, vector<128x128xf32> -> vector<128x128xf32>
    %13 = arith.addf %8, %12 : vector<128x128xf32>
    %c1 = arith.constant 1 : index
    %c0_14 = arith.constant 0 : index
    %14 = vector.load %arg6[%c1, %c0_14] : memref<176x128xbf16, #tpu.memory_space<vmem>>, vector<128x128xbf16>
    %c1_15 = arith.constant 1 : index
    %c0_16 = arith.constant 0 : index
    %c0_17 = arith.constant 0 : index
    %15 = vector.load %arg3[%c1_15, %c0_16, %c0_17] : memref<9x128x128xbf16, #tpu.memory_space<vmem>>, vector<1x128x128xbf16>
    %16 = vector.shape_cast %15 : vector<1x128x128xbf16> to vector<128x128xbf16>
    %cst_18 = arith.constant dense<0.000000e+00> : vector<128x128xf32>
    %17 = tpu.matmul %14, %16, %cst_18 {dimension_numbers = #tpu.dot_dimension_numbers<[1], [0], [0], [1], [0, 0, 1, 1], [], []>} : vector<128x128xbf16>, vector<128x128xbf16>, vector<128x128xf32> -> vector<128x128xf32>
    %18 = arith.addf %13, %17 : vector<128x128xf32>
    %c2 = arith.constant 2 : index
    %c0_19 = arith.constant 0 : index
    %19 = vector.load %arg6[%c2, %c0_19] : memref<176x128xbf16, #tpu.memory_space<vmem>>, vector<128x128xbf16>
    %c2_20 = arith.constant 2 : index
    %c0_21 = arith.constant 0 : index
    %c0_22 = arith.constant 0 : index
    %20 = vector.load %arg3[%c2_20, %c0_21, %c0_22] : memref<9x128x128xbf16, #tpu.memory_space<vmem>>, vector<1x128x128xbf16>
    %21 = vector.shape_cast %20 : vector<1x128x128xbf16> to vector<128x128xbf16>
    %cst_23 = arith.constant dense<0.000000e+00> : vector<128x128xf32>
    %22 = tpu.matmul %19, %21, %cst_23 {dimension_numbers = #tpu.dot_dimension_numbers<[1], [0], [0], [1], [0, 0, 1, 1], [], []>} : vector<128x128xbf16>, vector<128x128xbf16>, vector<128x128xf32> -> vector<128x128xf32>
    %23 = arith.addf %18, %22 : vector<128x128xf32>
    %c16 = arith.constant 16 : index
    %c0_24 = arith.constant 0 : index
    %24 = vector.load %arg6[%c16, %c0_24] : memref<176x128xbf16, #tpu.memory_space<vmem>>, vector<128x128xbf16>
    %c3 = arith.constant 3 : index
    %c0_25 = arith.constant 0 : index
    %c0_26 = arith.constant 0 : index
    %25 = vector.load %arg3[%c3, %c0_25, %c0_26] : memref<9x128x128xbf16, #tpu.memory_space<vmem>>, vector<1x128x128xbf16>
    %26 = vector.shape_cast %25 : vector<1x128x128xbf16> to vector<128x128xbf16>
    %cst_27 = arith.constant dense<0.000000e+00> : vector<128x128xf32>
    %27 = tpu.matmul %24, %26, %cst_27 {dimension_numbers = #tpu.dot_dimension_numbers<[1], [0], [0], [1], [0, 0, 1, 1], [], []>} : vector<128x128xbf16>, vector<128x128xbf16>, vector<128x128xf32> -> vector<128x128xf32>
    %28 = arith.addf %23, %27 : vector<128x128xf32>
    %c17 = arith.constant 17 : index
    %c0_28 = arith.constant 0 : index
    %29 = vector.load %arg6[%c17, %c0_28] : memref<176x128xbf16, #tpu.memory_space<vmem>>, vector<128x128xbf16>
    %c4 = arith.constant 4 : index
    %c0_29 = arith.constant 0 : index
    %c0_30 = arith.constant 0 : index
    %30 = vector.load %arg3[%c4, %c0_29, %c0_30] : memref<9x128x128xbf16, #tpu.memory_space<vmem>>, vector<1x128x128xbf16>
    %31 = vector.shape_cast %30 : vector<1x128x128xbf16> to vector<128x128xbf16>
    %cst_31 = arith.constant dense<0.000000e+00> : vector<128x128xf32>
    %32 = tpu.matmul %29, %31, %cst_31 {dimension_numbers = #tpu.dot_dimension_numbers<[1], [0], [0], [1], [0, 0, 1, 1], [], []>} : vector<128x128xbf16>, vector<128x128xbf16>, vector<128x128xf32> -> vector<128x128xf32>
    %33 = arith.addf %28, %32 : vector<128x128xf32>
    %c18 = arith.constant 18 : index
    %c0_32 = arith.constant 0 : index
    %34 = vector.load %arg6[%c18, %c0_32] : memref<176x128xbf16, #tpu.memory_space<vmem>>, vector<128x128xbf16>
    %c5 = arith.constant 5 : index
    %c0_33 = arith.constant 0 : index
    %c0_34 = arith.constant 0 : index
    %35 = vector.load %arg3[%c5, %c0_33, %c0_34] : memref<9x128x128xbf16, #tpu.memory_space<vmem>>, vector<1x128x128xbf16>
    %36 = vector.shape_cast %35 : vector<1x128x128xbf16> to vector<128x128xbf16>
    %cst_35 = arith.constant dense<0.000000e+00> : vector<128x128xf32>
    %37 = tpu.matmul %34, %36, %cst_35 {dimension_numbers = #tpu.dot_dimension_numbers<[1], [0], [0], [1], [0, 0, 1, 1], [], []>} : vector<128x128xbf16>, vector<128x128xbf16>, vector<128x128xf32> -> vector<128x128xf32>
    %38 = arith.addf %33, %37 : vector<128x128xf32>
    %c32 = arith.constant 32 : index
    %c0_36 = arith.constant 0 : index
    %39 = vector.load %arg6[%c32, %c0_36] : memref<176x128xbf16, #tpu.memory_space<vmem>>, vector<128x128xbf16>
    %c6 = arith.constant 6 : index
    %c0_37 = arith.constant 0 : index
    %c0_38 = arith.constant 0 : index
    %40 = vector.load %arg3[%c6, %c0_37, %c0_38] : memref<9x128x128xbf16, #tpu.memory_space<vmem>>, vector<1x128x128xbf16>
    %41 = vector.shape_cast %40 : vector<1x128x128xbf16> to vector<128x128xbf16>
    %cst_39 = arith.constant dense<0.000000e+00> : vector<128x128xf32>
    %42 = tpu.matmul %39, %41, %cst_39 {dimension_numbers = #tpu.dot_dimension_numbers<[1], [0], [0], [1], [0, 0, 1, 1], [], []>} : vector<128x128xbf16>, vector<128x128xbf16>, vector<128x128xf32> -> vector<128x128xf32>
    %43 = arith.addf %38, %42 : vector<128x128xf32>
    %c33 = arith.constant 33 : index
    %c0_40 = arith.constant 0 : index
    %44 = vector.load %arg6[%c33, %c0_40] : memref<176x128xbf16, #tpu.memory_space<vmem>>, vector<128x128xbf16>
    %c7 = arith.constant 7 : index
    %c0_41 = arith.constant 0 : index
    %c0_42 = arith.constant 0 : index
    %45 = vector.load %arg3[%c7, %c0_41, %c0_42] : memref<9x128x128xbf16, #tpu.memory_space<vmem>>, vector<1x128x128xbf16>
    %46 = vector.shape_cast %45 : vector<1x128x128xbf16> to vector<128x128xbf16>
    %cst_43 = arith.constant dense<0.000000e+00> : vector<128x128xf32>
    %47 = tpu.matmul %44, %46, %cst_43 {dimension_numbers = #tpu.dot_dimension_numbers<[1], [0], [0], [1], [0, 0, 1, 1], [], []>} : vector<128x128xbf16>, vector<128x128xbf16>, vector<128x128xf32> -> vector<128x128xf32>
    %48 = arith.addf %43, %47 : vector<128x128xf32>
    %c34 = arith.constant 34 : index
    %c0_44 = arith.constant 0 : index
    %49 = vector.load %arg6[%c34, %c0_44] : memref<176x128xbf16, #tpu.memory_space<vmem>>, vector<128x128xbf16>
    %c8 = arith.constant 8 : index
    %c0_45 = arith.constant 0 : index
    %c0_46 = arith.constant 0 : index
    %50 = vector.load %arg3[%c8, %c0_45, %c0_46] : memref<9x128x128xbf16, #tpu.memory_space<vmem>>, vector<1x128x128xbf16>
    %51 = vector.shape_cast %50 : vector<1x128x128xbf16> to vector<128x128xbf16>
    %cst_47 = arith.constant dense<0.000000e+00> : vector<128x128xf32>
    %52 = tpu.matmul %49, %51, %cst_47 {dimension_numbers = #tpu.dot_dimension_numbers<[1], [0], [0], [1], [0, 0, 1, 1], [], []>} : vector<128x128xbf16>, vector<128x128xbf16>, vector<128x128xf32> -> vector<128x128xf32>
    %53 = arith.addf %48, %52 : vector<128x128xf32>
    %cst_48 = arith.constant 0.000000e+00 : f32
    %54 = vector.broadcast %cst_48 : f32 to vector<128x128xf32>
    %55 = arith.maximumf %53, %54 : vector<128x128xf32>
    %c0_49 = arith.constant 0 : index
    %c0_50 = arith.constant 0 : index
    %c0_51 = arith.constant 0 : index
    %56 = vector.load %arg5[%c0_49, %c0_50, %c0_51] : memref<1x128x128xf32, #tpu.memory_space<vmem>>, vector<1x128x128xf32>
    %57 = vector.shape_cast %56 : vector<1x128x128xf32> to vector<128x128xf32>
    %58 = vector.shape_cast %55 : vector<128x128xf32> to vector<1x128x128xf32>
    tpu.vector_store %arg5[%c0_49, %c0_50, %c0_51], %58 {strides = array<i32>} : memref<1x128x128xf32, #tpu.memory_space<vmem>>, vector<1x128x128xf32>,
    return
  }
  func.func @transform_0(%arg0: i32) -> (i32, i32, i32) {
    %c0_i32 = arith.constant 0 : i32
    %c0_i32_0 = arith.constant 0 : i32
    %c0_i32_1 = arith.constant 0 : i32
    return %arg0, %c0_i32, %c0_i32_0 : i32, i32, i32
  }
  func.func @transform_1(%arg0: i32) -> (i32, i32) {
    %c0_i32 = arith.constant 0 : i32
    %c0_i32_0 = arith.constant 0 : i32
    %c0_i32_1 = arith.constant 0 : i32
    return %c0_i32, %c0_i32_0 : i32, i32
  }
  func.func @transform_2(%arg0: i32) -> (i32, i32, i32) {
    %c0_i32 = arith.constant 0 : i32
    %c0_i32_0 = arith.constant 0 : i32
    %c0_i32_1 = arith.constant 0 : i32
    %c0_i32_2 = arith.constant 0 : i32
    return %c0_i32, %c0_i32_0, %c0_i32_1 : i32, i32, i32
  }
  func.func @transform_3(%arg0: i32) -> (i32, i32) {
    %c0_i32 = arith.constant 0 : i32
    %c0_i32_0 = arith.constant 0 : i32
    %c0_i32_1 = arith.constant 0 : i32
    return %c0_i32, %c0_i32_0 : i32, i32
  }
  func.func @transform_4(%arg0: i32) -> (i32, i32, i32) {
    %c0_i32 = arith.constant 0 : i32
    %c0_i32_0 = arith.constant 0 : i32
    %c0_i32_1 = arith.constant 0 : i32
    return %arg0, %c0_i32, %c0_i32_0 : i32, i32, i32
  }
}

</mosaic_0001>

<bundles_post_ra>
// kernel: _lambda_.1
= control target key start
LH: loop header
LB: loop body
LE: loop exit
PB: predicated region body
PF: predicated region fallthrough
CT: control target
= control target key end

     0   :  { %v3318_v0 = vmov 0.0   ;;  %vm3319_vm0 = vmmov 0   ;;  %vm151_vm1 = vcmask 916480   ;;  %vm546_vm2 = vsmask.f32 7424  ;;  %s3924_s1 = inlined_call_operand.vmem [shape: bf16[112,128], index: 1, kind: input, shape index: {}]   ;;  %s3925_s0 = inlined_call_operand.vmem [shape: bf16[1,176,112], index: 0, kind: input, shape index: {}]   ;;  %s3926_s2 = inlined_call_operand.vmem [shape: bf16[9,128,128], index: 2, kind: input, shape index: {}]   ;;  %s3927_s3 = inlined_call_operand.vmem [shape: f32[1,128], index: 3, kind: input, shape index: {}]   ;;  %s3928_s4 = inlined_call_operand.vmem [shape: f32[1,128,128], index: 4, kind: output, shape index: {}]  }
   0x1   :  { %2736 = vmatprep.subr.bf16.mxu0 %v3318_v0  ;;  %v3228_v1 = vld [vmem:[%s3924_s1] sm:$0xff]   ;;  %2750 = vmatprep.mubr.msk.bf16.mxu0 %vm3319_vm0, %v3318_v0  ;;  %v3229_v2 = vld [vmem:[%s3924_s1 + $0x8] sm:$0xff]   ;;  %v3230_v3 = vld [vmem:[%s3924_s1 + $0x10] sm:$0xff]   ;;  %vm811_vm3 = vcmask 1046528  }
   0x2   :  { %2737 = vmatpush3.bf16.msra.mxu0 %v3228_v1  ;;  %v3231_v4 = vld [vmem:[%s3924_s1 + $0x18] sm:$0xff]   ;;  %v3232_v5 = vld [vmem:[%s3924_s1 + $0x20] sm:$0xff]   ;;  %v3233_v6 = vld [vmem:[%s3924_s1 + $0x28] sm:$0xff]  }
   0x3   :  { %2738 = vmatprep.subr.bf16.mxu0 %v3318_v0  ;;  %v3234_v7 = vld [vmem:[%s3924_s1 + $0x30] sm:$0xff]   ;;  %v3246_v8 = vld [vmem:[%s3926_s2] sm:$0xff]   ;;  %v3247_v11 = vld [vmem:[%s3926_s2 + $0x8] sm:$0xff]  }
   0x4   :  { %v3249_v9 = vld [vmem:[%s3926_s2 + $0xc0] sm:$0xff]   ;;  %v3248_v12 = vld [vmem:[%s3926_s2 + $0x10] sm:$0xff]   ;;  %v3236_v13 = vld [vmem:[%s3925_s0 + $0x8] sm:$0xff]  }
   0x5   :  { %v3235_v10 = vld [vmem:[%s3925_s0] sm:$0xff]   ;;  %2890 = vmatprep.subr.bf16.mxu1 %v3249_v9  ;;  %v3237_v14 = vld [vmem:[%s3925_s0 + $0x10] sm:$0xff]   ;;  %v3238_v15 = vld [vmem:[%s3925_s0 + $0x18] sm:$0xff]  }
   0x6   :  { %2739 = vmatpush3.bf16.msra.mxu0 %v3229_v2  ;;  %2891 = vmatpush3.bf16.msra.mxu1 %v3249_v9  ;;  %v3239_v16 = vld [vmem:[%s3925_s0 + $0x20] sm:$0xff]   ;;  %v3240_v17 = vld [vmem:[%s3925_s0 + $0x28] sm:$0xff]   ;;  %v3241_v18 = vld [vmem:[%s3925_s0 + $0x30] sm:$0xff]  }
   0x7   :  { %2740 = vmatprep.subr.bf16.mxu0 %v3318_v0  ;;  %v3242_v19 = vld [vmem:[%s3925_s0 + $0x38] sm:$0xff]   ;;  %v3243_v20 = vld [vmem:[%s3925_s0 + $0x40] sm:$0xff]   ;;  %v3244_v21 = vld [vmem:[%s3925_s0 + $0x48] sm:$0xff]  }
   0x8   :  { %v3250_v22 = vld [vmem:[%s3926_s2 + $0x18] sm:$0xff]   ;;  %v3251_v23 = vld [vmem:[%s3926_s2 + $0xc8] sm:$0xff]   ;;  %v3245_v24 = vld [vmem:[%s3925_s0 + $0x50] sm:$0xff]  }
   0x9   :  { %2892 = vmatprep.subr.bf16.mxu1 %v3251_v23  ;;  %v3252_v25 = vld [vmem:[%s3926_s2 + $0x20] sm:$0xff]   ;;  %v3253_v26 = vld [vmem:[%s3926_s2 + $0xd0] sm:$0xff]   ;;  %v3254_v27 = vld [vmem:[%s3926_s2 + $0x28] sm:$0xff]  }
   0xa   :  { %2741 = vmatpush3.bf16.msra.mxu0 %v3230_v3  ;;  %2893 = vmatpush3.bf16.msra.mxu1 %v3251_v23  ;;  %v3255_v28 = vld [vmem:[%s3926_s2 + $0xd8] sm:$0xff]   ;;  %v3256_v29 = vld [vmem:[%s3926_s2 + $0x30] sm:$0xff]   ;;  %v3257_v30 = vld [vmem:[%s3926_s2 + $0xe0] sm:$0xff]  }
   0xb   :  { %2742 = vmatprep.subr.bf16.mxu0 %v3318_v0  ;;  %2894 = vmatprep.subr.bf16.mxu1 %v3253_v26  ;;  %v3258_v31 = vld [vmem:[%s3926_s2 + $0x38] sm:$0xff]   ;;  %v3259_v32 = vld [vmem:[%s3926_s2 + $0xe8] sm:$0xff]   ;;  %v3260_v33 = vld [vmem:[%s3926_s2 + $0xf0] sm:$0xff]  }
   0xc   :  { %v3261_v34 = vld [vmem:[%s3926_s2 + $0xf8] sm:$0xff]   ;;  %v3262_v35 = vld [vmem:[%s3926_s2 + $0x40] sm:$0xff]   ;;  %v3263_v48 = vld [vmem:[%s3926_s2 + $0x48] sm:$0xff]  }
   0xd   :  { %v3264_v36 = vld [vmem:[%s3926_s2 + $0x100] sm:$0xff]   ;;  %v3265_v52 = vld [vmem:[%s3926_s2 + $0x50] sm:$0xff]   ;;  %v3266_v61 = vld [vmem:[%s3926_s2 + $0x108] sm:$0xff]  }
   0xe   :  { %2743 = vmatpush3.bf16.msra.mxu0 %v3231_v4  ;;  %2895 = vmatpush3.bf16.msra.mxu1 %v3253_v26  ;;  %v3267_v62 = vld [vmem:[%s3926_s2 + $0x58] sm:$0xff]   ;;  %v3268_v2 = vld [vmem:[%s3926_s2 + $0x110] sm:$0xff]   ;;  %v3269_v3 = vld [vmem:[%s3926_s2 + $0x60] sm:$0xff]  }
   0xf   :  { %2744 = vmatprep.subr.bf16.mxu0 %v3318_v0  ;;  %2896 = vmatprep.subr.bf16.mxu1 %v3255_v28  ;;  %v3275_v23 = vld [vmem:[%s3926_s2 + $0x78] sm:$0xff]  }
  0x12   :  { %2745 = vmatpush3.bf16.msra.mxu0 %v3232_v5  ;;  %2897 = vmatpush3.bf16.msra.mxu1 %v3255_v28 }
  0x13   :  { %2746 = vmatprep.subr.bf16.mxu0 %v3318_v0  ;;  %2898 = vmatprep.subr.bf16.mxu1 %v3257_v30 }
  0x16   :  { %2747 = vmatpush3.bf16.msra.mxu0 %v3233_v6  ;;  %2899 = vmatpush3.bf16.msra.mxu1 %v3257_v30 }
  0x17   :  { %2748 = vmatprep.subr.bf16.mxu0 %v3318_v0  ;;  %2900 = vmatprep.subr.bf16.mxu1 %v3259_v32 }
  0x1a   :  { %2749 = vmatpush3.bf16.msra.mxu0 %v3234_v7  ;;  %2901 = vmatpush3.bf16.msra.mxu1 %v3259_v32  ;;  %v3280_v32 = vld [vmem:[%s3926_s2 + $0x140] sm:$0xff]  }
  0x1b   :  { %2794 = vmatprep.subr.bf16.mxu0 %v3246_v8  ;;  %2902 = vmatprep.subr.bf16.mxu1 %v3260_v33 }
  0x1d   :  { %2751 = vmatmul.mubr.msk.bf16.vlgmr.msra.gmra.mrb[0].mxu0 %vm151_vm1, %v3235_v10  ;;  %v3270_v10 = vld [vmem:[%s3926_s2 + $0x118] sm:$0xff]  }
  0x1e   :  { %2754 = vmatprep.mubr.msk.bf16.mxu0 %vm3319_vm0, %v3318_v0  ;;  %2795 = vmatpush3.bf16.msra.mxu0 %v3246_v8 }
  0x1f   :  { %2796 = vmatprep.subr.bf16.mxu0 %v3247_v11  ;;  %2903 = vmatpush3.bf16.msra.mxu1 %v3260_v33 }
  0x20   :  { %2904 = vmatprep.subr.bf16.mxu1 %v3261_v34 }
  0x22   :  { %2797 = vmatpush3.bf16.msra.mxu0 %v3247_v11  ;;  %v3271_v11 = vld [vmem:[%s3926_s2 + $0x68] sm:$0xff]  }
  0x23   :  { %2798 = vmatprep.subr.bf16.mxu0 %v3248_v12  ;;  %2905 = vmatpush3.bf16.msra.mxu1 %v3261_v34 }
  0x24   :  { %2922 = vmatprep.subr.bf16.mxu1 %v3264_v36 }
  0x25   :  { %2755 = vmatmul.mubr.msk.bf16.gmra.mrb[4].mxu0 %vm151_vm1, %v3236_v13  ;;  %v3272_v13 = vld [vmem:[%s3926_s2 + $0x120] sm:$0xff]  }
  0x26   :  { %2758 = vmatprep.mubr.msk.bf16.mxu0 %vm3319_vm0, %v3318_v0  ;;  %2799 = vmatpush3.bf16.msra.mxu0 %v3248_v12 }
  0x27   :  { %2800 = vmatprep.subr.bf16.mxu0 %v3250_v22 }
  0x2a   :  { %2801 = vmatpush3.bf16.msra.mxu0 %v3250_v22  ;;  %v3274_v22 = vld [vmem:[%s3926_s2 + $0x128] sm:$0xff]  }
  0x2b   :  { %2802 = vmatprep.subr.bf16.mxu0 %v3252_v25 }
  0x2d   :  { %2759 = vmatmul.mubr.msk.bf16.gmra.mrb[8].mxu0 %vm151_vm1, %v3237_v14  ;;  %v3273_v14 = vld [vmem:[%s3926_s2 + $0x70] sm:$0xff]  }
  0x2e   :  { %2762 = vmatprep.mubr.msk.bf16.mxu0 %vm3319_vm0, %v3318_v0  ;;  %2803 = vmatpush3.bf16.msra.mxu0 %v3252_v25  ;;  %v3277_v25 = vld [vmem:[%s3926_s2 + $0x80] sm:$0xff]  }
  0x2f   :  { %2804 = vmatprep.subr.bf16.mxu0 %v3254_v27 }
  0x32   :  { %2805 = vmatpush3.bf16.msra.mxu0 %v3254_v27 }
  0x33   :  { %2806 = vmatprep.subr.bf16.mxu0 %v3256_v29 }
  0x35   :  { %2763 = vmatmul.mubr.msk.bf16.gmra.mrb[12].mxu0 %vm151_vm1, %v3238_v15 }
  0x36   :  { %2766 = vmatprep.mubr.msk.bf16.mxu0 %vm3319_vm0, %v3318_v0  ;;  %2807 = vmatpush3.bf16.msra.mxu0 %v3256_v29 }
  0x37   :  { %2808 = vmatprep.subr.bf16.mxu0 %v3258_v31 }
  0x3a   :  { %2809 = vmatpush3.bf16.msra.mxu0 %v3258_v31  ;;  %v3278_v31 = vld [vmem:[%s3926_s2 + $0x138] sm:$0xff]  }
  0x3b   :  { %2826 = vmatprep.subr.bf16.mxu0 %v3262_v35 }
  0x3d   :  { %2767 = vmatmul.mubr.msk.bf16.gmra.mrb[16].mxu0 %vm151_vm1, %v3239_v16 }
  0x3e   :  { %2770 = vmatprep.mubr.msk.bf16.mxu0 %vm3319_vm0, %v3318_v0 }
  0x45   :  { %2771 = vmatmul.mubr.msk.bf16.gmra.mrb[20].mxu0 %vm151_vm1, %v3240_v17 }
  0x46   :  { %2774 = vmatprep.mubr.msk.bf16.mxu0 %vm3319_vm0, %v3318_v0 }
  0x4d   :  { %2775 = vmatmul.mubr.msk.bf16.gmra.mrb[24].mxu0 %vm151_vm1, %v3241_v18 }
  0x4e   :  { %2778 = vmatprep.mubr.msk.bf16.mxu0 %vm3319_vm0, %v3318_v0 }
  0x55   :  { %2779 = vmatmul.mubr.msk.bf16.gmra.mrb[28].mxu0 %vm151_vm1, %v3242_v19 }
  0x56   :  { %2782 = vmatprep.mubr.msk.bf16.mxu0 %vm3319_vm0, %v3318_v0 }
  0x5d   :  { %2783 = vmatmul.mubr.msk.bf16.gmra.mrb[32].mxu0 %vm151_vm1, %v3243_v20 }
  0x5e   :  { %2786 = vmatprep.mubr.msk.bf16.mxu0 %vm3319_vm0, %v3318_v0 }
  0x65   :  { %2787 = vmatmul.mubr.msk.bf16.gmra.mrb[36].mxu0 %vm151_vm1, %v3244_v21 }
  0x66   :  { %2790 = vmatprep.mubr.msk.bf16.mxu0 %vm3319_vm0, %v3318_v0 }
  0x6d   :  { %2791 = vmatmul.mubr.msk.bf16.gmra.mrb[40].mxu0 %vm151_vm1, %v3245_v24  ;;  %v3276_v24 = vld [vmem:[%s3926_s2 + $0x130] sm:$0xff]  }
  0xf0   :  { %v219_v37 = vpop.f32.mrb[0].mxu0 }
  0xf1   :  { %v2752_v38 = vpop.f32.mrb[1].mxu0 }
  0xf2   :  { %v222_v39 = vpop.f32.mrb[2].mxu0 }
  0xf3   :  { %v306_v40 = vpack.c.bf16 %v222_v39, %v219_v37  ;;  %v2753_v41 = vpop.f32.mrb[3].mxu0 }
  0xf5   :  { %317 = vst [vmem:[#allocation2] sm:$0xff] %v306_v40  ;;  %2810 = vmatprep.mubr.bf16.mxu0 %v306_v40  ;;  %v550_v42 = vshll.u32 %v306_v40, 16  ;;  %v548_v50 = vshrl.u32 %v306_v40, 16 }
  0xf7   :  { %v552_v49 = vrot.slane %v550_v42, 1 }
  0xf8   :  { %v227_v43 = vpop.f32.mrb[4].mxu0 }
  0xf9   :  { %v2756_v44 = vpop.f32.mrb[5].mxu0  ;;  %v553_v53 = vor.u32 %v552_v49, %v548_v50 }
  0xfa   :  { %v230_v45 = vpop.f32.mrb[6].mxu0 }
  0xfb   :  { %v3493_v46 = vpack.c.bf16 %v230_v45, %v227_v43  ;;  %v2757_v47 = vpop.f32.mrb[7].mxu0 }
  0xfd   :  { %318 = vst [vmem:[#allocation2 + $0x8] sm:$0xff] %v3493_v46  ;;  %2811 = vmatmul.mubr.bf16.vlgmr.msra.gmra.mrb[44].mxu0 %v3493_v46  ;;  %2906 = vmatprep.mubr.bf16.mxu1 %v3493_v46  ;;  %v555_v51 = vshll.u32 %v3493_v46, 16  ;;  %v559_v43 = vshrl.u32 %v3493_v46, 16 }
  0xfe   :  { %2827 = vmatpush3.bf16.msra.mxu0 %v3262_v35 }
  0xff   :  { %2828 = vmatprep.subr.bf16.mxu0 %v3263_v48  ;;  %v3505_v54 = vrot.slane %v555_v51, 1  ;;  %v3279_v51 = vld [vmem:[%s3926_s2 + $0x88] sm:$0xff]  }
 0x100   :  { %v235_v55 = vpop.f32.mrb[8].mxu0 }
 0x101   :  { %v2760_v56 = vpop.f32.mrb[9].mxu0  ;;  %v3509_v57 = vsel %vm546_vm2, %v553_v53, %v3505_v54 }
 0x102   :  { %v238_v58 = vpop.f32.mrb[10].mxu0  ;;  %2829 = vmatpush3.bf16.msra.mxu0 %v3263_v48  ;;  %v561_v48 = vor.u32 %v559_v43, %v3505_v54  ;;  %v3281_v56 = vld [vmem:[%s3926_s2 + $0x90] sm:$0xff]  }
 0x103   :  { %v3511_v59 = vpack.c.bf16 %v238_v58, %v235_v55  ;;  %v2761_v60 = vpop.f32.mrb[11].mxu0  ;;  %2830 = vmatprep.subr.bf16.mxu0 %v3265_v52 }
 0x105   :  { %319 = vst [vmem:[#allocation2 + $0x10] sm:$0xff] %v3511_v59  ;;  %2814 = vmatprep.mubr.bf16.mxu0 %v3511_v59  ;;  %v563_v63 = vshll.u32 %v3511_v59, 16  ;;  %2907 = vmatmul.mubr.bf16.vlgmr.msra.gmra.mrb[0].mxu1 %v3511_v59  ;;  %v567_v1 = vshrl.u32 %v3511_v59, 16 }
 0x106   :  { %2923 = vmatpush3.bf16.msra.mxu1 %v3264_v36  ;;  %2831 = vmatpush3.bf16.msra.mxu0 %v3265_v52 }
 0x107   :  { %v3523_v0 = vrot.slane %v563_v63, 1  ;;  %2924 = vmatprep.subr.bf16.mxu1 %v3266_v61  ;;  %2832 = vmatprep.subr.bf16.mxu0 %v3267_v62 }
 0x108   :  { %v243_v4 = vpop.f32.mrb[12].mxu0 }
 0x109   :  { %v2764_v5 = vpop.f32.mrb[13].mxu0  ;;  %v1864_v6 = vor.u32 %v567_v1, %v3523_v0  ;;  %v566_v53 = vsel %vm546_vm2, %v561_v48, %v3523_v0  ;;  %v3290_v48 = vld [vmem:[%s3926_s2 + $0x168] sm:$0xff]  }
 0x10a   :  { %v246_v7 = vpop.f32.mrb[14].mxu0  ;;  %2925 = vmatpush3.bf16.msra.mxu1 %v3266_v61  ;;  %2833 = vmatpush3.bf16.msra.mxu0 %v3267_v62 }
 0x10b   :  { %v3533_v8 = vpack.c.bf16 %v246_v7, %v243_v4  ;;  %v2765_v9 = vpop.f32.mrb[15].mxu0  ;;  %2926 = vmatprep.subr.bf16.mxu1 %v3268_v2  ;;  %2834 = vmatprep.subr.bf16.mxu0 %v3269_v3  ;;  %v3283_v7 = vld [vmem:[%s3926_s2 + $0x98] sm:$0xff]  }
 0x10d   :  { %2815 = vmatmul.mubr.bf16.gmra.mrb[48].mxu0 %v3533_v8  ;;  %2910 = vmatprep.mubr.bf16.mxu1 %v3533_v8  ;;  %v571_v12 = vshll.u32 %v3533_v8, 16 }
 0x10e   :  { %2927 = vmatpush3.bf16.msra.mxu1 %v3268_v2  ;;  %2835 = vmatpush3.bf16.msra.mxu0 %v3269_v3 }
 0x10f   :  { %2928 = vmatprep.subr.bf16.mxu1 %v3270_v10  ;;  %2836 = vmatprep.subr.bf16.mxu0 %v3271_v11  ;;  %v3550_v15 = vrot.slane %v571_v12, 1 }
 0x110   :  { %v251_v16 = vpop.f32.mrb[16].mxu0 }
 0x111   :  { %v2768_v17 = vpop.f32.mrb[17].mxu0  ;;  %v3554_v18 = vsel %vm546_vm2, %v1864_v6, %v3550_v15  ;;  %v3282_v6 = vld [vmem:[%s3926_s2 + $0x148] sm:$0xff]  }
 0x112   :  { %v254_v19 = vpop.f32.mrb[18].mxu0  ;;  %2929 = vmatpush3.bf16.msra.mxu1 %v3270_v10  ;;  %2837 = vmatpush3.bf16.msra.mxu0 %v3271_v11  ;;  %v3284_v11 = vld [vmem:[%s3926_s2 + $0x150] sm:$0xff]  }
 0x113   :  { %v3556_v20 = vpack.c.bf16 %v254_v19, %v251_v16  ;;  %v2769_v21 = vpop.f32.mrb[19].mxu0  ;;  %2930 = vmatprep.subr.bf16.mxu1 %v3272_v13  ;;  %2838 = vmatprep.subr.bf16.mxu0 %v3273_v14 }
 0x115   :  { %2818 = vmatprep.mubr.bf16.mxu0 %v3556_v20  ;;  %2911 = vmatmul.mubr.bf16.gmra.mrb[4].mxu1 %v3556_v20  ;;  %v579_v52 = vshll.u32 %v3556_v20, 16  ;;  %v583_v60 = vshrl.u32 %v3556_v20, 16 }
 0x116   :  { %2931 = vmatpush3.bf16.msra.mxu1 %v3272_v13  ;;  %2839 = vmatpush3.bf16.msra.mxu0 %v3273_v14 }
 0x117   :  { %2932 = vmatprep.subr.bf16.mxu1 %v3274_v22  ;;  %2840 = vmatprep.subr.bf16.mxu0 %v3275_v23  ;;  %v581_v54 = vrot.slane %v579_v52, 1 }
 0x118   :  { %v259_v26 = vpop.f32.mrb[20].mxu0 }
 0x119   :  { %v2772_v27 = vpop.f32.mrb[21].mxu0  ;;  %v585_v2 = vor.u32 %v583_v60, %v581_v54  ;;  %v3692_v60 = vrot.slane %v3533_v8, 1 }
 0x11a   :  { %v262_v28 = vpop.f32.mrb[22].mxu0  ;;  %2933 = vmatpush3.bf16.msra.mxu1 %v3274_v22  ;;  %2841 = vmatpush3.bf16.msra.mxu0 %v3275_v23 }
 0x11b   :  { %v3572_v29 = vpack.c.bf16 %v262_v28, %v259_v26  ;;  %v2773_v30 = vpop.f32.mrb[23].mxu0  ;;  %2934 = vmatprep.subr.bf16.mxu1 %v3276_v24  ;;  %2858 = vmatprep.subr.bf16.mxu0 %v3277_v25  ;;  %v3286_v28 = vld [vmem:[%s3926_s2 + $0x158] sm:$0xff]  }
 0x11c   :  { %v3287_v30 = vld [vmem:[%s3926_s2 + $0xa8] sm:$0xff]  }
 0x11d   :  { %2819 = vmatmul.mubr.bf16.gmra.mrb[52].mxu0 %v3572_v29  ;;  %2914 = vmatprep.mubr.bf16.mxu1 %v3572_v29  ;;  %v587_v55 = vshll.u32 %v3572_v29, 16  ;;  %v591_v13 = vshrl.u32 %v3572_v29, 16 }
 0x11e   :  { %2935 = vmatpush3.bf16.msra.mxu1 %v3276_v24 }
 0x11f   :  { %2936 = vmatprep.subr.bf16.mxu1 %v3278_v31  ;;  %v589_v62 = vrot.slane %v587_v55, 1  ;;  %v1440_v55 = vld [vmem:[#allocation2 + $0x8] sm:$0xfe] }
 0x120   :  { %v267_v33 = vpop.f32.mrb[24].mxu0 }
 0x121   :  { %v2776_v34 = vpop.f32.mrb[25].mxu0  ;;  %v3627_v9 = vsel %vm546_vm2, %v585_v2, %v589_v62  ;;  %v593_v23 = vor.u32 %v591_v13, %v589_v62  ;;  %v3296_v13 = vld [vmem:[%s3926_s2 + $0x190] sm:$0xff]  }
 0x122   :  { %v270_v35 = vpop.f32.mrb[26].mxu0  ;;  %2937 = vmatpush3.bf16.msra.mxu1 %v3278_v31 }
 0x123   :  { %v3582_v36 = vpack.c.bf16 %v270_v35, %v267_v33  ;;  %v2777_v37 = vpop.f32.mrb[27].mxu0  ;;  %2954 = vmatprep.subr.bf16.mxu1 %v3280_v32  ;;  %v784_v33 = vld [vmem:[#allocation2] sm:$0xfe] }
 0x124   :  { %v3288_v35 = vld [vmem:[%s3926_s2 + $0x160] sm:$0xff]  }
 0x125   :  { %2822 = vmatprep.mubr.bf16.mxu0 %v3582_v36  ;;  %2915 = vmatmul.mubr.bf16.gmra.mrb[8].mxu1 %v3582_v36  ;;  %v595_v4 = vshll.u32 %v3582_v36, 16  ;;  %v599_v16 = vshrl.u32 %v3582_v36, 16 }
 0x127   :  { %v597_v12 = vrot.slane %v595_v4, 1  ;;  %v3294_v4 = vld [vmem:[%s3926_s2 + $0x180] sm:$0xff]  }
 0x128   :  { %v275_v38 = vpop.f32.mrb[28].mxu0 }
 0x129   :  { %v2780_v39 = vpop.f32.mrb[29].mxu0  ;;  %v3643_v27 = vsel %vm546_vm2, %v593_v23, %v597_v12 }
 0x12a   :  { %v278_v40 = vpop.f32.mrb[30].mxu0  ;;  %v3289_v39 = vld [vmem:[%s3926_s2 + $0xb0] sm:$0xff]  }
 0x12b   :  { %v3586_v41 = vpack.c.bf16 %v278_v40, %v275_v38  ;;  %v2781_v42 = vpop.f32.mrb[31].mxu0  ;;  %v812_v40 = vrot.slane %v784_v33, 1 }
 0x12c   :  { %v813_v42 = vrot.slane %v3493_v46, 1 }
 0x12d   :  { %2823 = vmatmul.mubr.bf16.gmra.mrb[56].mxu0 %v3586_v41  ;;  %2918 = vmatprep.mubr.bf16.mxu1 %v3586_v41  ;;  %v603_v10 = vshll.u32 %v3586_v41, 16  ;;  %v607_v37 = vshrl.u32 %v3586_v41, 16 }
 0x12e   :  { %2842 = vmatprep.mubr.bf16.mxu0 %v3509_v57  ;;  %v575_v57 = vshrl.u32 %v3533_v8, 16 }
 0x12f   :  { %v605_v19 = vrot.slane %v603_v10, 1  ;;  %v3295_v10 = vld [vmem:[%s3926_s2 + $0x188] sm:$0xff]  }
 0x130   :  { %v283_v44 = vpop.f32.mrb[32].mxu0  ;;  %v577_v0 = vor.u32 %v575_v57, %v3550_v15  ;;  %v3285_v15 = vld [vmem:[%s3926_s2 + $0xa0] sm:$0xff]   ;;  %v815_v57 = vrot.slane %v3511_v59, 1 }
 0x131   :  { %v2784_v45 = vpop.f32.mrb[33].mxu0 }
 0x132   :  { %v286_v47 = vpop.f32.mrb[34].mxu0  ;;  %v3615_v5 = vsel %vm546_vm2, %v577_v0, %v581_v54  ;;  %v816_v0 = vsel %vm811_vm3, %v813_v42, %v815_v57  ;;  %v818_v2 = vsel %vm811_vm3, %v815_v57, %v3692_v60 }
 0x133   :  { %v3593_v49 = vpack.c.bf16 %v286_v47, %v283_v44  ;;  %v2785_v50 = vpop.f32.mrb[35].mxu0  ;;  %v609_v44 = vor.u32 %v607_v37, %v605_v19  ;;  %v3305_v37 = vld [vmem:[%s3926_s2 + $0x1d8] sm:$0xff]  }
 0x134   :  { %v3291_v50 = vld [vmem:[%s3926_s2 + $0xb8] sm:$0xff]  }
 0x135   :  { %325 = vst [vmem:[#allocation2 + $0x40] sm:$0xff] %v3593_v49  ;;  %2843 = vmatmul.mubr.bf16.vlgmr.msra.gmra.mrb[44].mxu0 %v566_v53  ;;  %2919 = vmatmul.mubr.bf16.gmra.mrb[12].mxu1 %v3593_v49  ;;  %v1259_v34 = vshll.u32 %v3593_v49, 16  ;;  %v1263_v54 = vshrl.u32 %v3593_v49, 16 }
 0x136   :  { %2846 = vmatprep.mubr.bf16.mxu0 %v3554_v18  ;;  %2859 = vmatpush3.bf16.msra.mxu0 %v3277_v25  ;;  %v601_v25 = vor.u32 %v599_v16, %v597_v12  ;;  %v3297_v16 = vld [vmem:[%s3926_s2 + $0x198] sm:$0xff]  }
 0x137   :  { %2938 = vmatprep.mubr.bf16.mxu1 %v566_v53  ;;  %2860 = vmatprep.subr.bf16.mxu0 %v3279_v51  ;;  %v1261_v45 = vrot.slane %v1259_v34, 1  ;;  %v3292_v53 = vld [vmem:[%s3926_s2 + $0x170] sm:$0xff]   ;;  %v3302_v34 = vld [vmem:[%s3926_s2 + $0x1c0] sm:$0xff]  }
 0x138   :  { %v291_v58 = vpop.f32.mrb[36].mxu0 }
 0x139   :  { %v2788_v61 = vpop.f32.mrb[37].mxu0  ;;  %v3681_v52 = vsel %vm546_vm2, %v609_v44, %v1261_v45 }
 0x13a   :  { %v294_v63 = vpop.f32.mrb[38].mxu0  ;;  %2861 = vmatpush3.bf16.msra.mxu0 %v3279_v51  ;;  %v814_v51 = vsel %vm811_vm3, %v812_v40, %v813_v42  ;;  %v1467_v61 = vrot.slane %v1440_v55, 1  ;;  %v3315_v42 = vld [vmem:[%s3926_s2 + $0x228] sm:$0xff]  }
 0x13b   :  { %v3611_v1 = vpack.c.bf16 %v294_v63, %v291_v58  ;;  %2862 = vmatprep.subr.bf16.mxu0 %v3281_v56  ;;  %v2789_v3 = vpop.f32.mrb[39].mxu0  ;;  %v3689_v58 = vor.u32 %v1263_v54, %v1261_v45  ;;  %v3293_v63 = vld [vmem:[%s3926_s2 + $0x178] sm:$0xff]   ;;  %v3316_v45 = vld [vmem:[%s3926_s2 + $0x230] sm:$0xff]  }
 0x13c   :  { %v3640_v21 = vld [vmem:[#allocation2 + $0x40] sm:$0x1]  ;;  %v1469_v3 = vsel %vm811_vm3, %v1467_v61, %v815_v57 }
 0x13d   :  { %326 = vst [vmem:[#allocation2 + $0x48] sm:$0xff] %v3611_v1  ;;  %2847 = vmatmul.mubr.bf16.gmra.mrb[48].mxu0 %v3615_v5  ;;  %2939 = vmatmul.mubr.bf16.vlgmr.msra.gmra.mrb[0].mxu1 %v3554_v18  ;;  %v611_v31 = vshll.u32 %v3640_v21, 16  ;;  %v827_v23 = vrot.slane %v3640_v21, 1  ;;  %v3300_v21 = vld [vmem:[%s3926_s2 + $0x1b0] sm:$0xff]  }
 0x13e   :  { %2955 = vmatpush3.bf16.msra.mxu1 %v3280_v32  ;;  %2850 = vmatprep.mubr.bf16.mxu0 %v3627_v9  ;;  %v3655_v32 = vsel %vm546_vm2, %v601_v25, %v605_v19  ;;  %v3299_v25 = vld [vmem:[%s3926_s2 + $0x1a8] sm:$0xff]  }
 0x13f   :  { %2863 = vmatpush3.bf16.msra.mxu0 %v3281_v56  ;;  %2942 = vmatprep.mubr.bf16.mxu1 %v3615_v5  ;;  %v613_v38 = vrot.slane %v611_v31, 1  ;;  %v3301_v31 = vld [vmem:[%s3926_s2 + $0x1b8] sm:$0xff]  }
 0x140   :  { %2956 = vmatprep.subr.bf16.mxu1 %v3282_v6  ;;  %v299_v14 = vpop.f32.mrb[40].mxu0  ;;  %2864 = vmatprep.subr.bf16.mxu0 %v3283_v7 }
 0x141   :  { %v2792_v17 = vpop.f32.mrb[41].mxu0  ;;  %v614_v47 = vsel %vm546_vm2, %v609_v44, %v613_v38  ;;  %v3313_v38 = vld [vmem:[%s3926_s2 + $0x218] sm:$0xff]   ;;  %v2095_v44 = vld [vmem:[#allocation2 + $0x10] sm:$0xfe] }
 0x142   :  { %2957 = vmatpush3.bf16.msra.mxu1 %v3282_v6  ;;  %v302_v22 = vpop.f32.mrb[42].mxu0  ;;  %v819_v6 = vrot.slane %v3556_v20, 1 }
 0x143   :  { %2865 = vmatpush3.bf16.msra.mxu0 %v3283_v7  ;;  %v316_v24 = vpack.c.bf16 %v302_v22, %v299_v14  ;;  %2958 = vmatprep.subr.bf16.mxu1 %v3284_v11  ;;  %v2793_v26 = vpop.f32.mrb[43].mxu0  ;;  %v821_v7 = vrot.slane %v3572_v29, 1  ;;  %v823_v14 = vrot.slane %v3582_v36, 1  ;;  %v3298_v22 = vld [vmem:[%s3926_s2 + $0x1a0] sm:$0xff]  }
 0x144   :  { %2866 = vmatprep.subr.bf16.mxu0 %v3285_v15  ;;  %v3668_v43 = vld [vmem:[#allocation2 + $0x48] sm:$0x1] }
 0x145   :  { %327 = vst [vmem:[#allocation2 + $0x50] sm:$0xff] %v316_v24  ;;  %2851 = vmatmul.mubr.bf16.gmra.mrb[52].mxu0 %v3643_v27  ;;  %2943 = vmatmul.mubr.bf16.gmra.mrb[4].mxu1 %v3627_v9  ;;  %v1267_v46 = vshll.u32 %v3668_v43, 16  ;;  %v3717_v12 = vsel %vm811_vm3, %v819_v6, %v821_v7  ;;  %v3730_v17 = vsel %vm811_vm3, %v821_v7, %v823_v14  ;;  %v3744_v24 = vrot.slane %v3593_v49, 1 }
 0x146   :  { %2959 = vmatpush3.bf16.msra.mxu1 %v3284_v11  ;;  %2854 = vmatprep.mubr.bf16.mxu0 %v3655_v32  ;;  %v3713_v11 = vsel %vm811_vm3, %v3692_v60, %v819_v6 }
 0x147   :  { %2867 = vmatpush3.bf16.msra.mxu0 %v3285_v15  ;;  %2946 = vmatprep.mubr.bf16.mxu1 %v3643_v27  ;;  %v1269_v56 = vrot.slane %v1267_v46, 1  ;;  %v825_v15 = vrot.slane %v3586_v41, 1  ;;  %v3317_v46 = vld [vmem:[%s3926_s2 + $0x238] sm:$0xff]  }
 0x148   :  { %2960 = vmatprep.subr.bf16.mxu1 %v3286_v28  ;;  %2868 = vmatprep.subr.bf16.mxu0 %v3287_v30 }
 0x149   :  { %v1270_v62 = vsel %vm546_vm2, %v3689_v58, %v1269_v56  ;;  %v3735_v19 = vsel %vm811_vm3, %v823_v14, %v825_v15  ;;  %v828_v26 = vsel %vm811_vm3, %v825_v15, %v827_v23 }
 0x14a   :  { %2961 = vmatpush3.bf16.msra.mxu1 %v3286_v28  ;;  %v3753_v28 = vsel %vm811_vm3, %v825_v15, %v3744_v24 }
 0x14b   :  { %2869 = vmatpush3.bf16.msra.mxu0 %v3287_v30  ;;  %2962 = vmatprep.subr.bf16.mxu1 %v3288_v35  ;;  %v1482_v30 = vrot.slane %v3668_v43, 1 }
 0x14c   :  { %2870 = vmatprep.subr.bf16.mxu0 %v3289_v39  ;;  %v1840_v40 = vld [vmem:[#allocation2 + $0x50] sm:$0x1] }
 0x14d   :  { %2855 = vmatmul.mubr.bf16.gmra.mrb[56].mxu0 %v614_v47  ;;  %2947 = vmatmul.mubr.bf16.gmra.mrb[8].mxu1 %v3655_v32  ;;  %v1483_v33 = vsel %vm811_vm3, %v3744_v24, %v1482_v30  ;;  %v1922_v43 = vshll.u32 %v1840_v40, 16  ;;  %v2137_v54 = vrot.slane %v1840_v40, 1 }
 0x14e   :  { %2963 = vmatpush3.bf16.msra.mxu1 %v3288_v35  ;;  %2874 = vmatprep.mubr.bf16.mxu0 %v814_v51  ;;  %v3303_v35 = vld [vmem:[%s3926_s2 + $0x1c8] sm:$0xff]  }
 0x14f   :  { %2871 = vmatpush3.bf16.msra.mxu0 %v3289_v39  ;;  %2950 = vmatprep.mubr.bf16.mxu1 %v3681_v52  ;;  %v1914_v39 = vshll.u32 %v3611_v1, 16  ;;  %v1924_v47 = vrot.slane %v1922_v43, 1 }
 0x150   :  { %2964 = vmatprep.subr.bf16.mxu1 %v3290_v48  ;;  %2872 = vmatprep.subr.bf16.mxu0 %v3291_v50 }
 0x152   :  { %2965 = vmatpush3.bf16.msra.mxu1 %v3290_v48  ;;  %v2122_v48 = vrot.slane %v2095_v44, 1 }
 0x153   :  { %2873 = vmatpush3.bf16.msra.mxu0 %v3291_v50  ;;  %2966 = vmatprep.subr.bf16.mxu1 %v3292_v53 }
 0x155   :  { %2951 = vmatmul.mubr.bf16.gmra.mrb[12].mxu1 %v1270_v62 }
 0x156   :  { %2875 = vmatmul.mubr.bf16.vlgmr.msra.gmra.mrb[44].mxu0 %v816_v0  ;;  %2967 = vmatpush3.bf16.msra.mxu1 %v3292_v53  ;;  %v2135_v53 = vrot.slane %v3611_v1, 1 }
 0x157   :  { %2878 = vmatprep.mubr.bf16.mxu0 %v818_v2  ;;  %2970 = vmatprep.mubr.bf16.mxu1 %v1469_v3 }
 0x158   :  { %2968 = vmatprep.subr.bf16.mxu1 %v3293_v63  ;;  %v2136_v55 = vsel %vm811_vm3, %v3744_v24, %v2135_v53  ;;  %v2138_v56 = vsel %vm811_vm3, %v2135_v53, %v2137_v54 }
 0x15a   :  { %2969 = vmatpush3.bf16.msra.mxu1 %v3293_v63 }
 0x15b   :  { %2986 = vmatprep.subr.bf16.mxu1 %v3294_v4 }
 0x15d   :  { %2971 = vmatmul.mubr.bf16.vlgmr.msra.gmra.mrb[0].mxu1 %v818_v2 }
 0x15e   :  { %2879 = vmatmul.mubr.bf16.gmra.mrb[48].mxu0 %v3713_v11  ;;  %2987 = vmatpush3.bf16.msra.mxu1 %v3294_v4 }
 0x15f   :  { %2882 = vmatprep.mubr.bf16.mxu0 %v3717_v12  ;;  %2974 = vmatprep.mubr.bf16.mxu1 %v3713_v11 }
 0x160   :  { %2988 = vmatprep.subr.bf16.mxu1 %v3295_v10 }
 0x162   :  { %2989 = vmatpush3.bf16.msra.mxu1 %v3295_v10 }
 0x163   :  { %2990 = vmatprep.subr.bf16.mxu1 %v3296_v13 }
 0x165   :  { %2975 = vmatmul.mubr.bf16.gmra.mrb[4].mxu1 %v3717_v12 }
 0x166   :  { %2883 = vmatmul.mubr.bf16.gmra.mrb[52].mxu0 %v3730_v17  ;;  %2991 = vmatpush3.bf16.msra.mxu1 %v3296_v13  ;;  %v3854_v13 = vld [vmem:[%s3927_s3] ss:$0 sm:$0xff] }
 0x167   :  { %2886 = vmatprep.mubr.bf16.mxu0 %v3735_v19  ;;  %2978 = vmatprep.mubr.bf16.mxu1 %v3730_v17 }
 0x168   :  { %2992 = vmatprep.subr.bf16.mxu1 %v3297_v16 }
 0x16a   :  { %2993 = vmatpush3.bf16.msra.mxu1 %v3297_v16 }
 0x16b   :  { %2994 = vmatprep.subr.bf16.mxu1 %v3298_v22 }
 0x16d   :  { %2979 = vmatmul.mubr.bf16.gmra.mrb[8].mxu1 %v3735_v19 }
 0x16e   :  { %2887 = vmatmul.mubr.bf16.gmra.mrb[56].mxu0 %v828_v26  ;;  %2995 = vmatpush3.bf16.msra.mxu1 %v3298_v22 }
 0x16f   :  { %2982 = vmatprep.mubr.bf16.mxu1 %v3753_v28  ;;  %2996 = vmatprep.subr.bf16.mxu1 %v3299_v25 }
 0x172   :  { %2997 = vmatpush3.bf16.msra.mxu1 %v3299_v25 }
 0x173   :  { %2998 = vmatprep.subr.bf16.mxu1 %v3300_v21 }
 0x175   :  { %2983 = vmatmul.mubr.bf16.gmra.mrb[12].mxu1 %v1483_v33 }
 0x176   :  { %2999 = vmatpush3.bf16.msra.mxu1 %v3300_v21  ;;  %3002 = vmatprep.mubr.bf16.mxu1 %v3511_v59  ;;  %v3304_v59 = vld [vmem:[%s3926_s2 + $0x1d0] sm:$0xff]  }
 0x177   :  { %3000 = vmatprep.subr.bf16.mxu1 %v3301_v31 }
 0x17a   :  { %3001 = vmatpush3.bf16.msra.mxu1 %v3301_v31 }
 0x17b   :  { %3018 = vmatprep.subr.bf16.mxu1 %v3302_v34 }
 0x17d   :  { %3003 = vmatmul.mubr.bf16.vlgmr.msra.gmra.mrb[0].mxu1 %v3533_v8  ;;  %v3306_v8 = vld [vmem:[%s3926_s2 + $0x1e0] sm:$0xff]  }
 0x17e   :  { %3019 = vmatpush3.bf16.msra.mxu1 %v3302_v34  ;;  %3006 = vmatprep.mubr.bf16.mxu1 %v3556_v20  ;;  %v3307_v20 = vld [vmem:[%s3926_s2 + $0x1e8] sm:$0xff]  }
 0x17f   :  { %3020 = vmatprep.subr.bf16.mxu1 %v3303_v35 }
 0x182   :  { %3021 = vmatpush3.bf16.msra.mxu1 %v3303_v35 }
 0x183   :  { %3022 = vmatprep.subr.bf16.mxu1 %v3304_v59 }
 0x185   :  { %3007 = vmatmul.mubr.bf16.gmra.mrb[4].mxu1 %v3572_v29  ;;  %v3308_v29 = vld [vmem:[%s3926_s2 + $0x1f0] sm:$0xff]  }
 0x186   :  { %3023 = vmatpush3.bf16.msra.mxu1 %v3304_v59  ;;  %3010 = vmatprep.mubr.bf16.mxu1 %v3582_v36  ;;  %v3309_v36 = vld [vmem:[%s3926_s2 + $0x1f8] sm:$0xff]  }
 0x187   :  { %3024 = vmatprep.subr.bf16.mxu1 %v3305_v37 }
 0x18a   :  { %3025 = vmatpush3.bf16.msra.mxu1 %v3305_v37 }
 0x18b   :  { %3026 = vmatprep.subr.bf16.mxu1 %v3306_v8 }
 0x18d   :  { %3011 = vmatmul.mubr.bf16.gmra.mrb[8].mxu1 %v3586_v41  ;;  %v3310_v41 = vld [vmem:[%s3926_s2 + $0x200] sm:$0xff]  }
 0x18e   :  { %3027 = vmatpush3.bf16.msra.mxu1 %v3306_v8  ;;  %3014 = vmatprep.mubr.bf16.mxu1 %v3593_v49  ;;  %v3311_v49 = vld [vmem:[%s3926_s2 + $0x208] sm:$0xff]  }
 0x18f   :  { %3028 = vmatprep.subr.bf16.mxu1 %v3307_v20 }
 0x192   :  { %3029 = vmatpush3.bf16.msra.mxu1 %v3307_v20 }
 0x193   :  { %3030 = vmatprep.subr.bf16.mxu1 %v3308_v29 }
 0x195   :  { %3015 = vmatmul.mubr.bf16.gmra.mrb[12].mxu1 %v3611_v1 }
 0x196   :  { %3031 = vmatpush3.bf16.msra.mxu1 %v3308_v29  ;;  %3034 = vmatprep.mubr.bf16.mxu1 %v3554_v18  ;;  %v3312_v18 = vld [vmem:[%s3926_s2 + $0x210] sm:$0xff]  }
 0x197   :  { %3032 = vmatprep.subr.bf16.mxu1 %v3309_v36 }
 0x19a   :  { %3033 = vmatpush3.bf16.msra.mxu1 %v3309_v36 }
 0x19b   :  { %3050 = vmatprep.subr.bf16.mxu1 %v3310_v41 }
 0x19d   :  { %3035 = vmatmul.mubr.bf16.vlgmr.msra.gmra.mrb[0].mxu1 %v3615_v5  ;;  %v3314_v5 = vld [vmem:[%s3926_s2 + $0x220] sm:$0xff]  }
 0x19e   :  { %3051 = vmatpush3.bf16.msra.mxu1 %v3310_v41  ;;  %3038 = vmatprep.mubr.bf16.mxu1 %v3627_v9  ;;  %v1916_v9 = vrot.slane %v1914_v39, 1 }
 0x19f   :  { %3052 = vmatprep.subr.bf16.mxu1 %v3311_v49 }
 0x1a2   :  { %3053 = vmatpush3.bf16.msra.mxu1 %v3311_v49 }
 0x1a3   :  { %3054 = vmatprep.subr.bf16.mxu1 %v3312_v18 }
 0x1a5   :  { %3039 = vmatmul.mubr.bf16.gmra.mrb[4].mxu1 %v3643_v27  ;;  %v1917_v27 = vsel %vm546_vm2, %v3689_v58, %v1916_v9 }
 0x1a6   :  { %3055 = vmatpush3.bf16.msra.mxu1 %v3312_v18  ;;  %3042 = vmatprep.mubr.bf16.mxu1 %v3655_v32  ;;  %v1918_v32 = vshrl.u32 %v3611_v1, 16 }
 0x1a7   :  { %3056 = vmatprep.subr.bf16.mxu1 %v3313_v38 }
 0x1a8   :  { %v1920_v50 = vor.u32 %v1918_v32, %v1916_v9 }
 0x1aa   :  { %3057 = vmatpush3.bf16.msra.mxu1 %v3313_v38  ;;  %v1925_v51 = vsel %vm546_vm2, %v1920_v50, %v1924_v47 }
 0x1ab   :  { %3058 = vmatprep.subr.bf16.mxu1 %v3314_v5 }
 0x1ad   :  { %3043 = vmatmul.mubr.bf16.gmra.mrb[8].mxu1 %v3681_v52  ;;  %v2124_v52 = vsel %vm811_vm3, %v2122_v48, %v3692_v60 }
 0x1ae   :  { %3059 = vmatpush3.bf16.msra.mxu1 %v3314_v5  ;;  %3046 = vmatprep.mubr.bf16.mxu1 %v1917_v27 }
 0x1af   :  { %3060 = vmatprep.subr.bf16.mxu1 %v3315_v42 }
 0x1b2   :  { %3061 = vmatpush3.bf16.msra.mxu1 %v3315_v42 }
 0x1b3   :  { %3062 = vmatprep.subr.bf16.mxu1 %v3316_v45 }
 0x1b5   :  { %3047 = vmatmul.mubr.bf16.gmra.mrb[12].mxu1 %v1925_v51 }
 0x1b6   :  { %3063 = vmatpush3.bf16.msra.mxu1 %v3316_v45  ;;  %3066 = vmatprep.mubr.bf16.mxu1 %v2124_v52 }
 0x1b7   :  { %3064 = vmatprep.subr.bf16.mxu1 %v3317_v46 }
 0x1ba   :  { %3065 = vmatpush3.bf16.msra.mxu1 %v3317_v46 }
 0x1bd   :  { %3067 = vmatmul.mubr.bf16.vlgmr.msra.gmra.mrb[0].mxu1 %v3713_v11 }
 0x1be   :  { %3070 = vmatprep.mubr.bf16.mxu1 %v3717_v12 }
 0x1c5   :  { %3071 = vmatmul.mubr.bf16.gmra.mrb[4].mxu1 %v3730_v17 }
 0x1c6   :  { %3074 = vmatprep.mubr.bf16.mxu1 %v3735_v19 }
 0x1cd   :  { %3075 = vmatmul.mubr.bf16.gmra.mrb[8].mxu1 %v3753_v28 }
 0x1ce   :  { %3078 = vmatprep.mubr.bf16.mxu1 %v2136_v55 }
 0x1d5   :  { %3079 = vmatmul.mubr.bf16.gmra.mrb[12].mxu1 %v2138_v56 }
 0x229   :  { %v2876_v57 = vpop.f32.mrb[44].mxu0 }
 0x22a   :  { %v919_v58 = vpop.f32.mrb[45].mxu0  ;;  %v3082_v14 = vadd.f32 %v2876_v57, %v3854_v13 }
 0x22b   :  { %v2877_v60 = vpop.f32.mrb[46].mxu0  ;;  %v3084_v15 = vadd.f32 %v3854_v13, %v919_v58 }
 0x22c   :  { %v922_v61 = vpop.f32.mrb[47].mxu0  ;;  %v3086_v17 = vadd.f32 %v2877_v60, %v3854_v13 }
 0x22d   :  { %v3088_v23 = vadd.f32 %v3854_v13, %v922_v61 }
 0x231   :  { %v2880_v62 = vpop.f32.mrb[48].mxu0 }
 0x232   :  { %v935_v63 = vpop.f32.mrb[49].mxu0  ;;  %v3090_v35 = vadd.f32 %v2880_v62, %v3854_v13 }
 0x233   :  { %v2881_v0 = vpop.f32.mrb[50].mxu0  ;;  %v3092_v59 = vadd.f32 %v3854_v13, %v935_v63 }
 0x234   :  { %v938_v2 = vpop.f32.mrb[51].mxu0  ;;  %v3094_v8 = vadd.f32 %v2881_v0, %v3854_v13 }
 0x235   :  { %v3096_v36 = vadd.f32 %v3854_v13, %v938_v2 }
 0x239   :  { %v2884_v3 = vpop.f32.mrb[52].mxu0 }
 0x23a   :  { %v951_v1 = vpop.f32.mrb[53].mxu0  ;;  %v3098_v43 = vadd.f32 %v2884_v3, %v3854_v13 }
 0x23b   :  { %v2885_v4 = vpop.f32.mrb[54].mxu0  ;;  %v3100_v27 = vadd.f32 %v3854_v13, %v951_v1 }
 0x23c   :  { %v954_v6 = vpop.f32.mrb[55].mxu0  ;;  %v3102_v44 = vadd.f32 %v2885_v4, %v3854_v13 }
 0x23d   :  { %v3104_v48 = vadd.f32 %v3854_v13, %v954_v6 }
 0x241   :  { %v3843_v7 = vpop.f32.mrb[56].mxu0 }
 0x242   :  { %v3845_v10 = vpop.f32.mrb[57].mxu0  ;;  %v3106_v58 = vadd.f32 %v3843_v7, %v3854_v13 }
 0x243   :  { %v3847_v11 = vpop.f32.mrb[58].mxu0  ;;  %v3108_v60 = vadd.f32 %v3854_v13, %v3845_v10 }
 0x244   :  { %v3849_v12 = vpop.f32.mrb[59].mxu0  ;;  %v3110_v62 = vadd.f32 %v3847_v11, %v3854_v13 }
 0x245   :  { %v3112_v2 = vadd.f32 %v3854_v13, %v3849_v12 }
 0x290   :  { %v3068_v16 = vpop.f32.mrb[0].mxu1 }
 0x291   :  { %v3083_v19 = vadd.f32 %v3082_v14, %v3068_v16  ;;  %v2229_v22 = vpop.f32.mrb[1].mxu1 }
 0x292   :  { %v3085_v24 = vadd.f32 %v3084_v15, %v2229_v22  ;;  %v3069_v25 = vpop.f32.mrb[2].mxu1 }
 0x293   :  { %v2310_v26 = vmax.f32 %v3083_v19, 0.0  ;;  %v3087_v28 = vadd.f32 %v3086_v17, %v3069_v25  ;;  %v2232_v21 = vpop.f32.mrb[3].mxu1 }
 0x294   :  { %v2308_v30 = vmax.f32 %v3085_v24, 0.0  ;;  %v3089_v31 = vadd.f32 %v3088_v23, %v2232_v21 }
 0x295   :  { %2326 = vst [vmem:[%s3928_s4 + $0x10] sm:$0xff] %v2310_v26  ;;  %v2311_v33 = vmax.f32 %v3087_v28, 0.0 }
 0x296   :  { %2324 = vst [vmem:[%s3928_s4] sm:$0xff] %v2308_v30  ;;  %v2309_v34 = vmax.f32 %v3089_v31, 0.0 }
 0x297   :  { %2327 = vst [vmem:[%s3928_s4 + $0x18] sm:$0xff] %v2311_v33 }
 0x298   :  { %2325 = vst [vmem:[%s3928_s4 + $0x8] sm:$0xff] %v2309_v34  ;;  %v3072_v37 = vpop.f32.mrb[4].mxu1 }
 0x299   :  { %v3091_v20 = vadd.f32 %v3090_v35, %v3072_v37  ;;  %v2245_v29 = vpop.f32.mrb[5].mxu1 }
 0x29a   :  { %v3093_v41 = vadd.f32 %v3092_v59, %v2245_v29  ;;  %v3073_v49 = vpop.f32.mrb[6].mxu1 }
 0x29b   :  { %v2314_v18 = vmax.f32 %v3091_v20, 0.0  ;;  %v3095_v38 = vadd.f32 %v3094_v8, %v3073_v49  ;;  %v2248_v39 = vpop.f32.mrb[7].mxu1 }
 0x29c   :  { %v2312_v5 = vmax.f32 %v3093_v41, 0.0  ;;  %v3097_v9 = vadd.f32 %v3096_v36, %v2248_v39 }
 0x29d   :  { %2330 = vst [vmem:[%s3928_s4 + $0x30] sm:$0xff] %v2314_v18  ;;  %v2315_v40 = vmax.f32 %v3095_v38, 0.0 }
 0x29e   :  { %2328 = vst [vmem:[%s3928_s4 + $0x20] sm:$0xff] %v2312_v5  ;;  %v2313_v42 = vmax.f32 %v3097_v9, 0.0 }
 0x29f   :  { %2331 = vst [vmem:[%s3928_s4 + $0x38] sm:$0xff] %v2315_v40 }
 0x2a0   :  { %2329 = vst [vmem:[%s3928_s4 + $0x28] sm:$0xff] %v2313_v42  ;;  %v3076_v32 = vpop.f32.mrb[8].mxu1 }
 0x2a1   :  { %v3099_v45 = vadd.f32 %v3098_v43, %v3076_v32  ;;  %v2261_v47 = vpop.f32.mrb[9].mxu1 }
 0x2a2   :  { %v3101_v50 = vadd.f32 %v3100_v27, %v2261_v47  ;;  %v3077_v46 = vpop.f32.mrb[10].mxu1 }
 0x2a3   :  { %v2318_v51 = vmax.f32 %v3099_v45, 0.0  ;;  %v3103_v52 = vadd.f32 %v3102_v44, %v3077_v46  ;;  %v2264_v53 = vpop.f32.mrb[11].mxu1 }
 0x2a4   :  { %v2316_v55 = vmax.f32 %v3101_v50, 0.0  ;;  %v3105_v54 = vadd.f32 %v3104_v48, %v2264_v53 }
 0x2a5   :  { %2334 = vst [vmem:[%s3928_s4 + $0x50] sm:$0xff] %v2318_v51  ;;  %v2319_v56 = vmax.f32 %v3103_v52, 0.0 }
 0x2a6   :  { %2332 = vst [vmem:[%s3928_s4 + $0x40] sm:$0xff] %v2316_v55  ;;  %v2317_v57 = vmax.f32 %v3105_v54, 0.0 }
 0x2a7   :  { %2335 = vst [vmem:[%s3928_s4 + $0x58] sm:$0xff] %v2319_v56 }
 0x2a8   :  { %2333 = vst [vmem:[%s3928_s4 + $0x48] sm:$0xff] %v2317_v57  ;;  %v3080_v61 = vpop.f32.mrb[12].mxu1 }
 0x2a9   :  { %v3107_v63 = vadd.f32 %v3106_v58, %v3080_v61  ;;  %v2277_v0 = vpop.f32.mrb[13].mxu1 }
 0x2aa   :  { %v3109_v3 = vadd.f32 %v3108_v60, %v2277_v0  ;;  %v3081_v1 = vpop.f32.mrb[14].mxu1 }
 0x2ab   :  { %v2322_v4 = vmax.f32 %v3107_v63, 0.0  ;;  %v3111_v6 = vadd.f32 %v3110_v62, %v3081_v1  ;;  %v2280_v7 = vpop.f32.mrb[15].mxu1 }
 0x2ac   :  { %v2320_v14 = vmax.f32 %v3109_v3, 0.0  ;;  %v3113_v10 = vadd.f32 %v3112_v2, %v2280_v7 }
 0x2ad   :  { %2338 = vst [vmem:[%s3928_s4 + $0x70] sm:$0xff] %v2322_v4  ;;  %v2323_v15 = vmax.f32 %v3111_v6, 0.0 }
 0x2ae   :  { %2336 = vst [vmem:[%s3928_s4 + $0x60] sm:$0xff] %v2320_v14  ;;  %v2321_v11 = vmax.f32 %v3113_v10, 0.0 }
 0x2af   :  { %2339 = vst [vmem:[%s3928_s4 + $0x78] sm:$0xff] %v2323_v15 }
 0x2b0   :  { %2337 = vst [vmem:[%s3928_s4 + $0x68] sm:$0xff] %v2321_v11 }

</bundles_post_ra>
